<compile_context>
chip_gen: v7x
topology: tpu7x:2x2x1
jax: 0.10.0
libtpu: 0.0.40
codegen_flags: <defaults>
</compile_context>

<pallas_src>
import functools

import jax
import jax.numpy as jnp
from jax.experimental import pallas as pl
from jax.experimental.pallas import tpu as pltpu


def _round_up(n, m):
    return ((n + m - 1) // m) * m


# --------------------------------------------------------------------------- #
# Kernel: one MXU matmul + bias per batch tile.
# --------------------------------------------------------------------------- #
def _kernel(x_ref, w_ref, b_ref, o_ref):
    # x_ref: [TB, F]   w_ref: [F, E]   b_ref: [1, E]   o_ref: [TB, E]
    o_ref[...] = (
        jnp.dot(x_ref[...], w_ref[...], preferred_element_type=jnp.float32)
        + b_ref[...]
    ).astype(o_ref.dtype)


# --------------------------------------------------------------------------- #
# Offline parameter fold (plain JAX, done once per parameter set; eval mode).
# --------------------------------------------------------------------------- #
def fold_params(params, num_features):
    """Fold scalar/limb embeddings + fusion layer into one affine map.

    Eval mode only (Dropout == identity).  The feature-column selection
    (subject_features[:, 1:7]) is folded in as well: W_eff has shape
    [num_features, E] with zero rows for unused columns, so the kernel can
    consume the full feature matrix with no wrapper-side slice.
    """
    assert num_features >= 7, "module reads feature columns 1..6"
    E = params["b_fusion"].shape[-1]
    wf = params["w_fusion"]                                  # [5E, E]
    seg = lambda k: wf[k * E:(k + 1) * E, :]                 # [E, E]

    w_scalar_eff = jnp.stack(
        [params["w_scalar"][k] @ seg(k) for k in range(4)], axis=0)   # [4, E]
    w_limb_eff = params["w_limb"] @ seg(4)                            # [2, E]

    w_eff = jnp.zeros((num_features, E), jnp.float32)
    w_eff = w_eff.at[1:5].set(w_scalar_eff).at[5:7].set(w_limb_eff)   # [F, E]

    b_eff = params["b_fusion"] + params["b_limb"] @ seg(4)            # [1, E]
    for k in range(4):
        b_eff = b_eff + params["b_scalar"][k:k + 1] @ seg(k)

    return {"w_eff": w_eff, "b_eff": b_eff}


# --------------------------------------------------------------------------- #
# Wrapper
# --------------------------------------------------------------------------- #
def _default_min_steps():
    """One grid step per TensorCore: 2 on v7x (2 TCs/chip), else 1."""
    try:
        kind = jax.devices()[0].device_kind.lower()
        return 2 if "v7" in kind else 1
    except Exception:  # pragma: no cover - best-effort detection only
        return 1


@functools.partial(
    jax.jit, static_argnames=("out_dtype", "min_steps", "vmem_budget_bytes"))
def embedder_forward(subject_features, folded, *, out_dtype=jnp.float32,
                     min_steps=1, vmem_budget_bytes=12 << 20):
    """Fused eval-mode forward: subject_features [B, F] (F >= 7) -> [B, E]."""
    B, F = subject_features.shape
    E = folded["w_eff"].shape[-1]
    assert folded["w_eff"].shape[0] == F, "fold_params num_features mismatch"

    o_item = jnp.dtype(out_dtype).itemsize

    # ---- grid / tile sizing: as few steps as VMEM allows (review items 1-3).
    row_bytes = 4 * F + o_item * E                 # one x row + one out row
    max_tile = max(8, ((vmem_budget_bytes // (2 * row_bytes)) // 8) * 8)
    n_steps = max(int(min_steps), pl.cdiv(B, max_tile))
    sub = 8 if o_item >= 4 else 16                 # sublane multiple per dtype
    tb = _round_up(pl.cdiv(B, n_steps), sub)
    b_pad = n_steps * tb                           # padding <= sub*n_steps rows

    x = subject_features
    if b_pad != B:
        x = jnp.pad(x, ((0, b_pad - B), (0, 0)))

    # ---- scoped-VMEM limit only when the tiles actually need more than the
    #      smallest per-generation default (16 MiB on v5e).
    vmem_need = 2 * (tb * F * 4 + tb * E * o_item + F * E * 4 + E * 4)
    vmem_limit = None
    if vmem_need > 12 * 1024 * 1024:
        vmem_limit = min(int(vmem_need * 5 // 4) + (1 << 20), 48 * 1024 * 1024)

    out = pl.pallas_call(
        _kernel,
        out_shape=jax.ShapeDtypeStruct((b_pad, E), out_dtype),
        grid=(n_steps,),
        in_specs=[
            pl.BlockSpec((tb, F), lambda i: (i, 0)),     # x: tiled over batch
            pl.BlockSpec((F, E), lambda i: (0, 0)),      # W_eff: VMEM-resident
            pl.BlockSpec((1, E), lambda i: (0, 0)),      # b_eff: VMEM-resident
        ],
        # Logical E as the output block width (full-array last dim): no lane
        # padding, no padded store + trailing slice double-pass.
        out_specs=pl.BlockSpec((tb, E), lambda i: (i, 0)),
        compiler_params=pltpu.CompilerParams(
            dimension_semantics=("parallel",),           # 2-TC sharding on v7x
            vmem_limit_bytes=vmem_limit,
        ),
    )(x, folded["w_eff"], folded["b_eff"])

    # Row slice only when padding was required (<= a few rows; padded rows hold
    # b_eff, never exposed to the caller).
    return out if b_pad == B else out[:B]


# --------------------------------------------------------------------------- #
# Parameter init (matches the PyTorch module's shapes; nn.Linear default init)
# --------------------------------------------------------------------------- #
def init_params(key, embedding_dim):
    E = embedding_dim
    ks = jax.random.split(key, 12)

    def lin(kw, kb, fan_in, fan_out):
        bound = 1.0 / (fan_in ** 0.5)
        w = jax.random.uniform(kw, (fan_in, fan_out), jnp.float32, -bound, bound)
        b = jax.random.uniform(kb, (fan_out,), jnp.float32, -bound, bound)
        return w, b

    wh, bh = lin(ks[0], ks[1], 1, E)          # height_embedding
    ww, bw = lin(ks[2], ks[3], 1, E)          # weight_embedding
    wm, bm = lin(ks[4], ks[5], 1, E)          # muscle_embedding
    wf_, bf_ = lin(ks[6], ks[7], 1, E)        # fat_embedding
    wl, bl = lin(ks[8], ks[9], 2, E)          # limb_embedding
    wfu, bfu = lin(ks[10], ks[11], 5 * E, E)  # fusion_layer

    return {
        "w_scalar": jnp.concatenate([wh, ww, wm, wf_], axis=0),   # [4, E]
        "b_scalar": jnp.stack([bh, bw, bm, bf_], axis=0),         # [4, E]
        "w_limb": wl,                                             # [2, E]
        "b_limb": bl[None, :],                                    # [1, E]
        "w_fusion": wfu,                                          # [5E, E]
        "b_fusion": bfu[None, :],                                 # [1, E]
    }


def _reference(x, p):
    """Pure-JAX reference of the original (unfolded) eval-mode forward."""
    h_emb = x[:, 1:2] * p["w_scalar"][0:1] + p["b_scalar"][0:1]
    w_emb = x[:, 2:3] * p["w_scalar"][1:2] + p["b_scalar"][1:2]
    m_emb = x[:, 3:4] * p["w_scalar"][2:3] + p["b_scalar"][2:3]
    f_emb = x[:, 4:5] * p["w_scalar"][3:4] + p["b_scalar"][3:4]
    l_emb = x[:, 5:7] @ p["w_limb"] + p["b_limb"]
    cat = jnp.concatenate([h_emb, w_emb, m_emb, f_emb, l_emb], axis=1)
    return cat @ p["w_fusion"] + p["b_fusion"]


if __name__ == "__main__":
    key = jax.random.PRNGKey(0)
    auto_steps = _default_min_steps()

    # (B, F, E, out_dtype, min_steps, atol/rtol)
    cases = [
        (8,   8, 32,  jnp.float32,  1,          1e-4),  # tiny; masked vst path
        (9,   8, 128, jnp.float32,  1,          1e-4),  # row padding + row slice
        (256, 8, 128, jnp.float32,  2,          1e-4),  # 2-step parallel grid
        (256, 8, 128, jnp.bfloat16, auto_steps, 5e-2),  # bf16 output path
    ]

    for case_idx, (B, F, E, odt, msteps, tol) in enumerate(cases):
        k_x, k_p = jax.random.split(jax.random.fold_in(key, case_idx))
        subject_features = jax.random.normal(k_x, (B, F), dtype=jnp.float32)
        params = init_params(k_p, E)
        folded = fold_params(params, num_features=F)

        out = embedder_forward(subject_features, folded,
                               out_dtype=odt, min_steps=msteps)
        out = jax.block_until_ready(out)

        ref = _reference(subject_features, params)
        assert out.shape == (B, E), (case_idx, out.shape)
        assert out.dtype == jnp.dtype(odt), (case_idx, out.dtype)
        assert jnp.allclose(out.astype(jnp.float32), ref, atol=tol, rtol=tol), (
            f"mismatch vs reference (case {case_idx})"
        )

    print("KERNEL_OK")
</pallas_src>

<mosaic_0001>
module attributes {stable_mosaic.version = 11 : i64} {
  func.func @_kernel(%arg0: i32, %arg1: memref<8x8xf32, #tpu.memory_space<vmem>>, %arg2: memref<8x32xf32, #tpu.memory_space<vmem>>, %arg3: memref<1x32xf32, #tpu.memory_space<vmem>>, %arg4: memref<8x32xf32, #tpu.memory_space<vmem>>) attributes {dimension_semantics = [#tpu.dimension_semantics<parallel>], iteration_bounds = array<i64: 1>, scalar_prefetch = 0 : i64, scratch_operands = 0 : i64, tpu.core_type = #tpu.core_type<tc>, window_params = [{transform_indices = @transform_0, window_bounds = array<i64: 8, 8>}, {pipeline_mode = #tpu.pipeline_mode<synchronous>, transform_indices = @transform_1, window_bounds = array<i64: 8, 32>}, {pipeline_mode = #tpu.pipeline_mode<synchronous>, transform_indices = @transform_2, window_bounds = array<i64: 1, 32>}, {transform_indices = @transform_3, window_bounds = array<i64: 8, 32>}]} {
    %c0 = arith.constant 0 : index
    %c0_0 = arith.constant 0 : index
    %0 = vector.load %arg1[%c0, %c0_0] : memref<8x8xf32, #tpu.memory_space<vmem>>, vector<8x8xf32>
    %c0_1 = arith.constant 0 : index
    %c0_2 = arith.constant 0 : index
    %1 = vector.load %arg2[%c0_1, %c0_2] : memref<8x32xf32, #tpu.memory_space<vmem>>, vector<8x32xf32>
    %cst = arith.constant dense<0.000000e+00> : vector<8x32xf32>
    %2 = tpu.matmul %0, %1, %cst {dimension_numbers = #tpu.dot_dimension_numbers<[1], [0], [0], [1], [0, 0, 1, 1], [], []>} : vector<8x8xf32>, vector<8x32xf32>, vector<8x32xf32> -> vector<8x32xf32>
    %c0_3 = arith.constant 0 : index
    %c0_4 = arith.constant 0 : index
    %3 = vector.load %arg3[%c0_3, %c0_4] : memref<1x32xf32, #tpu.memory_space<vmem>>, vector<1x32xf32>
    %4 = vector.broadcast %3 : vector<1x32xf32> to vector<8x32xf32>
    %5 = arith.addf %2, %4 : vector<8x32xf32>
    %c0_5 = arith.constant 0 : index
    %c0_6 = arith.constant 0 : index
    %6 = vector.load %arg4[%c0_5, %c0_6] : memref<8x32xf32, #tpu.memory_space<vmem>>, vector<8x32xf32>
    tpu.vector_store %arg4[%c0_5, %c0_6], %5 {strides = array<i32>} : memref<8x32xf32, #tpu.memory_space<vmem>>, vector<8x32xf32>,
    return
  }
  func.func @transform_0(%arg0: i32) -> (i32, i32) {
    %c0_i32 = arith.constant 0 : i32
    %c0_i32_0 = arith.constant 0 : i32
    return %arg0, %c0_i32 : i32, i32
  }
  func.func @transform_1(%arg0: i32) -> (i32, i32) {
    %c0_i32 = arith.constant 0 : i32
    %c0_i32_0 = arith.constant 0 : i32
    %c0_i32_1 = arith.constant 0 : i32
    return %c0_i32, %c0_i32_0 : i32, i32
  }
  func.func @transform_2(%arg0: i32) -> (i32, i32) {
    %c0_i32 = arith.constant 0 : i32
    %c0_i32_0 = arith.constant 0 : i32
    %c0_i32_1 = arith.constant 0 : i32
    return %c0_i32, %c0_i32_0 : i32, i32
  }
  func.func @transform_3(%arg0: i32) -> (i32, i32) {
    %c0_i32 = arith.constant 0 : i32
    %c0_i32_0 = arith.constant 0 : i32
    return %arg0, %c0_i32 : i32, i32
  }
}

</mosaic_0001>

<bundles_post_ra>
// kernel: embedder_forward.1
= control target key start
LH: loop header
LB: loop body
LE: loop exit
PB: predicated region body
PF: predicated region fallthrough
CT: control target
= control target key end

     0   :  { %8 = vsyncpa [#allocation3], 0  ;;  %s290_s0 = inlined_call_operand.hbm [shape: f32[8,8], index: 0, kind: input, shape index: {}]   ;;  %s291_s1 = inlined_call_operand.hbm [shape: f32[8,32], index: 1, kind: input, shape index: {}]   ;;  %s292_s2 = inlined_call_operand.vmem [shape: f32[1,32], index: 2, kind: input, shape index: {}]   ;;  %s293_s3 = inlined_call_operand.hbm [shape: f32[8,32], index: 3, kind: output, shape index: {}]  }
   0x1   :  { %9 = vsyncpa [#allocation6], 0 }
   0x2   :  { %10 = vsyncpa [#allocation4], 0  ;;  %s226_s12 = smov [#allocation2]   ;;  %s227_s14 = smov [#allocation5]  }
   0x3   :  { %s17_s13 = sshll.u32 %s226_s12, 4  ;;  %s27_s15 = sshll.u32 %s227_s14, 4  ;;  %s18_s13 = int_to_ptr.vmem [resolvable:$true] %s17_s13  ;;  %s28_s15 = int_to_ptr.vmem [resolvable:$true] %s27_s15 }
   0x4   :  { %s154_s18 = scalar_lea.hbm %s290_s0, 128 }
   0x5   :  { %p155_p0 = scmp.ne.s32.totalorder %s290_s0, %s154_s18  ;;  %p158_p1 = scmp.lt.u32.totalorder %s154_s18, %s290_s0 }
   0x7   :  { %p160_p2 = pnand %p158_p1, %p155_p0 }
   0x9   :  { %163 = shalt.err (!%p160_p2)
}
   0xa   :  { %s164_s23 = scalar_lea.vmem %s18_s13, 128  ;;  %p169_p4 = scmp.lt.s32.totalorder %s18_s13, %s18_s13 }
   0xb   :  { %p165_p3 = scmp.ne.s32.totalorder %s18_s13, %s164_s23  ;;  %p170_p5 = scmp.lt.s32.totalorder %s164_s23, %s164_s23 }
   0xd   :  { %p171_p6 = por %p170_p5, %p169_p4 }
   0xf   :  { %p172_p7 = pnand %p171_p6, %p165_p3 }
  0x11   :  { %175 = shalt.err (!%p172_p7)
}
  0x12   :  { %20 = dma.hbm_to_vmem [thread:$0]  %s290_s0, 128, %s18_s13, [#allocation3]  }
  0x13   :  { %s176_s28 = scalar_lea.hbm %s291_s1, 128 }
  0x14   :  { %p177_p8 = scmp.ne.s32.totalorder %s291_s1, %s176_s28  ;;  %p180_p9 = scmp.lt.u32.totalorder %s176_s28, %s291_s1 }
  0x16   :  { %p182_p10 = pnand %p180_p9, %p177_p8 }
  0x18   :  { %185 = shalt.err (!%p182_p10)
}
  0x19   :  { %s186_s6 = scalar_lea.vmem %s28_s15, 128  ;;  %p191_p12 = scmp.lt.s32.totalorder %s28_s15, %s28_s15 }
  0x1a   :  { %p187_p11 = scmp.ne.s32.totalorder %s28_s15, %s186_s6  ;;  %p192_p13 = scmp.lt.s32.totalorder %s186_s6, %s186_s6 }
  0x1c   :  { %p193_p0 = por %p192_p13, %p191_p12 }
  0x1e   :  { %p194_p1 = pnand %p193_p0, %p187_p11 }
  0x20   :  { %197 = shalt.err (!%p194_p1)
}
  0x21   :  { %30 = dma.hbm_to_vmem [thread:$0]  %s291_s1, 128, %s28_s15, [#allocation6]  }
  0x22   :  { %220 = dma.done.wait [#allocation3], 128  }
  0x23   :  { %221 = vsyncadd [#allocation3], 4294967168 }
  0x24   :  { %222 = dma.done.wait [#allocation6], 128  }
  0x25   :  { %223 = vsyncadd [#allocation6], 4294967168  ;;  %v228_v0 = vmov 0.0   ;;  %vm229_vm0 = vmmov 0   ;;  %vm48_vm1 = vcmask 64512   ;;  %v40_v1 = vld [vmem:[#allocation5] sm:$0xff] }
  0x26   :  { %144 = vmatprep.subr.mxu0 %v228_v0  ;;  %146 = vmatprep.mubr.msk.f32.mxu0 %vm229_vm0, %v228_v0  ;;  %v39_v2 = vld [vmem:[#allocation2] sm:$0xff]  ;;  %s230_s10 = smov [#allocation7]   ;;  %vm122_vm2 = vcmask 261120  }
  0x27   :  { %145 = vmatpush3.msra.mxu0 %v40_v1  ;;  %v140_v3 = vld [vmem:[%s292_s2] ss:$0 sm:$0xff]  ;;  %s130_s11 = sshll.u32 %s230_s10, 4  ;;  %s131_s11 = int_to_ptr.vmem [resolvable:$true] %s130_s11 }
  0x28   :  { %147 = vmatmul.mubr.msk.f32.vlgmr.msra.gmra.mrb[0].mxu0 %vm48_vm1, %v39_v2  ;;  %s198_s1 = scalar_lea.vmem %s131_s11, 128  ;;  %p203_p3 = scmp.lt.s32.totalorder %s131_s11, %s131_s11 }
  0x29   :  { %p199_p2 = scmp.ne.s32.totalorder %s131_s11, %s198_s1  ;;  %p204_p4 = scmp.lt.s32.totalorder %s198_s1, %s198_s1 }
  0x2b   :  { %p205_p5 = por %p204_p4, %p203_p3 }
  0x2d   :  { %p206_p6 = pnand %p205_p5, %p199_p2 }
  0xfb   :  { %v118_v4 = vpop.f32.mrb[0].mxu0 }
  0xfc   :  { %v119_v5 = vadd.f32 %v140_v3, %v118_v4  ;;  %v148_v6 = vpop.f32.mrb[1].mxu0 }
  0xfe   :  { %123 = vst.msk [vmem:[#allocation7] sm:$0xff] %vm122_vm2, %v119_v5 }
  0xff   :  { %209 = shalt.err (!%p206_p6)
}
 0x100   :  { %s210_s14 = scalar_lea.hbm %s293_s3, 128 }
 0x101   :  { %p211_p7 = scmp.ne.s32.totalorder %s293_s3, %s210_s14  ;;  %p214_p8 = scmp.lt.u32.totalorder %s210_s14, %s293_s3 }
 0x103   :  { %p216_p9 = pnand %p214_p8, %p211_p7 }
 0x105   :  { %219 = shalt.err (!%p216_p9)
}
 0x106   :  { %133 = dma.vmem_to_hbm [thread:$0]  %s131_s11, 128, %s293_s3, [#allocation4]  }
 0x107   :  { %224 = dma.done.wait [#allocation4], 128  }
 0x108   :  { %225 = vsyncadd [#allocation4], 4294967168 }
 0x109   :  { %137 = vsyncpa [#allocation3], 1 }
 0x10a   :  { %138 = vsyncpa [#allocation6], 1 }
 0x10b   :  { %139 = vsyncpa [#allocation4], 1 }

</bundles_post_ra>
